<compile_context>
chip_gen: v6e
topology: v6e:2x2x1
jax: 0.10.0
libtpu: 0.0.40
codegen_flags: <defaults>
</compile_context>

<pallas_src>
import math

import jax
import jax.numpy as jnp
from jax.experimental import pallas as pl
from jax.experimental.pallas import tpu as pltpu


def _copy_kernel(x_ref, o_ref):
    # Pure passthrough: the PyTorch forward performs no arithmetic on x.
    o_ref[...] = x_ref[...]


# Conservative per-block VMEM budget: with double-buffered input + output the
# pipeline holds ~4 x block_bytes, so 2 MiB/block keeps us under ~8 MiB --
# comfortably inside every generation's scoped-VMEM default.
_MAX_BLOCK_BYTES = 2 * 1024 * 1024
_MAX_LANE_WIDTH = 2048  # lane-dense target: large multiple of 128


def _lane_dense_2d_shape(shape):
    """Pick a [rows, cols] view: cols a multiple of 128, rows a multiple of 8."""
    total = math.prod(shape)
    widest = None
    for k in range(_MAX_LANE_WIDTH // 128, 0, -1):
        cols = 128 * k
        if total % cols:
            continue
        if widest is None:
            widest = (total // cols, cols)          # lane-dense fallback
        if (total // cols) % 8 == 0:
            return total // cols, cols              # lane- AND sublane-dense
    if widest is not None:
        return widest
    # TODO(synk): element count not a multiple of 128 -> narrow trailing dim
    # (masked partial stores); acceptable for the debug-only path.
    return total // shape[-1], shape[-1]


def identity_touch(x):
    """Debug-only Pallas identity copy of x (same shape/dtype returned)."""
    rows, cols = _lane_dense_2d_shape(x.shape)
    x2d = x.reshape(rows, cols)

    bytes_per_row = cols * x2d.dtype.itemsize
    tile_rows = max(8, (_MAX_BLOCK_BYTES // bytes_per_row) // 8 * 8)
    if rows <= tile_rows:
        tile_rows = rows                   # full-extent block (always legal)
    grid_rows = pl.cdiv(rows, tile_rows)

    y2d = pl.pallas_call(
        _copy_kernel,
        out_shape=jax.ShapeDtypeStruct((rows, cols), x2d.dtype),
        grid=(grid_rows,),
        in_specs=[pl.BlockSpec((tile_rows, cols), lambda i: (i, 0))],
        out_specs=pl.BlockSpec((tile_rows, cols), lambda i: (i, 0)),
        compiler_params=pltpu.CompilerParams(
            # "parallel" lets v7x shard the row tiles across its 2 TensorCores;
            # neutral on single-core v5e/v6e.
            dimension_semantics=("parallel",),
        ),
    )(x2d)
    return y2d.reshape(x.shape)


class OTLossPallas:
    """JAX/Pallas mirror of scplan.Critic.OTLoss.

    No parameters (module __init__ defines none).  forward(x) returns None,
    exactly matching the PyTorch reference.  By default it launches NO kernel
    (the fastest faithful implementation of `pass`).  Construct with
    debug_touch=True to route x through the Pallas identity kernel purely for
    TPU pipeline exercising/tests.
    """

    def __init__(self, debug_touch: bool = False):
        self.debug_touch = debug_touch

    def forward(self, x):
        if self.debug_touch:
            # Debug-only touch; result intentionally unused, no host sync here.
            identity_touch(x)
        # Faithful to `def forward(self, x): pass`
        return None

    __call__ = forward


if __name__ == "__main__":
    key = jax.random.PRNGKey(0)
    # Small NCHW input consistent with a conv-style critic input.
    x = jax.random.normal(key, (2, 4, 16, 16), dtype=jnp.float32)

    # Production path: no kernel launch, returns None like the PyTorch forward.
    module = OTLossPallas()
    out = module(x)
    assert out is None

    # Exercise + verify the debug identity kernel once (bitwise, NaN-safe).
    y = identity_touch(x)
    jax.block_until_ready(y)
    x_bits = jax.lax.bitcast_convert_type(x, jnp.int32)
    y_bits = jax.lax.bitcast_convert_type(y, jnp.int32)
    assert bool(jnp.all(y_bits == x_bits)), "Pallas identity kernel mismatch"

    print("KERNEL_OK")
</pallas_src>

<mosaic_0001>
module attributes {stable_mosaic.version = 11 : i64} {
  func.func @_copy_kernel(%arg0: i32, %arg1: memref<8x256xf32, #tpu.memory_space<vmem>>, %arg2: memref<8x256xf32, #tpu.memory_space<vmem>>) attributes {dimension_semantics = [#tpu.dimension_semantics<parallel>], iteration_bounds = array<i64: 1>, scalar_prefetch = 0 : i64, scratch_operands = 0 : i64, tpu.core_type = #tpu.core_type<tc>, window_params = [{transform_indices = @transform_0, window_bounds = array<i64: 8, 256>}, {transform_indices = @transform_1, window_bounds = array<i64: 8, 256>}]} {
    %c0 = arith.constant 0 : index
    %c0_0 = arith.constant 0 : index
    %0 = vector.load %arg1[%c0, %c0_0] : memref<8x256xf32, #tpu.memory_space<vmem>>, vector<8x256xf32>
    %c0_1 = arith.constant 0 : index
    %c0_2 = arith.constant 0 : index
    %1 = vector.load %arg2[%c0_1, %c0_2] : memref<8x256xf32, #tpu.memory_space<vmem>>, vector<8x256xf32>
    tpu.vector_store %arg2[%c0_1, %c0_2], %0 {strides = array<i32>} : memref<8x256xf32, #tpu.memory_space<vmem>>, vector<8x256xf32>,
    return
  }
  func.func @transform_0(%arg0: i32) -> (i32, i32) {
    %c0_i32 = arith.constant 0 : i32
    %c0_i32_0 = arith.constant 0 : i32
    return %arg0, %c0_i32 : i32, i32
  }
  func.func @transform_1(%arg0: i32) -> (i32, i32) {
    %c0_i32 = arith.constant 0 : i32
    %c0_i32_0 = arith.constant 0 : i32
    return %arg0, %c0_i32 : i32, i32
  }
}

</mosaic_0001>

<bundles_post_ra>
// kernel: tpu_custom_call.1
= control target key start
LH: loop header
LB: loop body
LE: loop exit
PB: predicated region body
PF: predicated region fallthrough
CT: control target
= control target key end

     0   :  { %6 = vsyncpa [#allocation3], 0  ;;  %s104_s0 = inlined_call_operand.hbm [shape: f32[8,256], index: 0, kind: input, shape index: {}]   ;;  %s105_s1 = inlined_call_operand.hbm [shape: f32[8,256], index: 1, kind: output, shape index: {}]  }
   0x1   :  { %7 = vsyncpa [#allocation4], 0  ;;  %s86_s6 = smov [#allocation2]  }
   0x2   :  { %s14_s7 = sshll.u32 %s86_s6, 4  ;;  %s15_s7 = int_to_ptr.vmem [resolvable:$true] %s14_s7 }
   0x3   :  { %s50_s8 = scalar_lea.vmem %s15_s7, 256  ;;  %p55_p1 = scmp.lt.s32.totalorder %s15_s7, %s15_s7 }
   0x4   :  { %p51_p0 = scmp.ne.s32.totalorder %s15_s7, %s50_s8  ;;  %p56_p2 = scmp.lt.s32.totalorder %s50_s8, %s50_s8 }
   0x6   :  { %p57_p3 = por %p56_p2, %p55_p1 }
   0x8   :  { %p58_p4 = pnand %p57_p3, %p51_p0 }
   0xa   :  { %61 = shalt.err (!%p58_p4)
}
   0xb   :  { %17 = dma.hbm_to_vmem [thread:$0]  %s104_s0, 256, %s15_s7, [#allocation3]  }
   0xc   :  { %82 = dma.done.wait [#allocation3], 256  }
   0xd   :  { %83 = vsyncadd [#allocation3], 4294967040  ;;  %s87_s11 = smov [#allocation5]   ;;  %v21_v0 = vld [vmem:[#allocation2] sm:$0xff]  ;;  %v22_v1 = vld [vmem:[#allocation2 + $0x8] sm:$0xff] }
   0xe   :  { %s31_s12 = sshll.u32 %s87_s11, 4  ;;  %23 = vst [vmem:[#allocation5] sm:$0xff] %v21_v0  ;;  %24 = vst [vmem:[#allocation5 + $0x8] sm:$0xff] %v22_v1  ;;  %s32_s12 = int_to_ptr.vmem [resolvable:$true] %s31_s12 }
   0xf   :  { %s62_s13 = scalar_lea.vmem %s32_s12, 256  ;;  %p67_p6 = scmp.lt.s32.totalorder %s32_s12, %s32_s12 }
  0x10   :  { %p63_p5 = scmp.ne.s32.totalorder %s32_s12, %s62_s13  ;;  %p68_p7 = scmp.lt.s32.totalorder %s62_s13, %s62_s13 }
  0x12   :  { %p69_p8 = por %p68_p7, %p67_p6 }
  0x14   :  { %p70_p9 = pnand %p69_p8, %p63_p5 }
  0x16   :  { %73 = shalt.err (!%p70_p9)
}
  0x17   :  { %34 = dma.vmem_to_hbm [thread:$0]  %s32_s12, 256, %s105_s1, [#allocation4]  }
  0x18   :  { %84 = dma.done.wait [#allocation4], 256  }
  0x19   :  { %85 = vsyncadd [#allocation4], 4294967040 }
  0x1a   :  { %38 = vsyncpa [#allocation3], 1 }
  0x1b   :  { %39 = vsyncpa [#allocation4], 1 }

</bundles_post_ra>
